<compile_context>
chip_gen: v5e
topology: v5e:2x2
jax: 0.10.0
libtpu: 0.0.40
codegen_flags: <defaults>
</compile_context>

<pallas_src>
import jax
import jax.numpy as jnp
from jax.experimental import pallas as pl
from jax.experimental.pallas import tpu as pltpu

# Target bytes per grid-step block of x (and of the output).  ~2 MiB sits on the
# roofline plateau on all of v5e / v6e / v7x and keeps the double-buffered
# in+out footprint far below every chip's scoped-VMEM default.
_TARGET_BLOCK_BYTES = 2 * 1024 * 1024


def _add_pos_kernel(x_ref, pos_ref, o_ref):
    """x_ref: (rows, F); pos_ref: (1, F) f32 positions row; o_ref: (rows, F)."""
    x = x_ref[...]
    # Compute in f32, cast only at the store (correct for bf16 activations too).
    o_ref[...] = (x.astype(jnp.float32) + pos_ref[...]).astype(o_ref.dtype)


@jax.jit
def image_positional_encoding(x, w, b):
    """x: (B, P, S).  w: (S, 1) PyTorch nn.Linear(1, S) weight.  b: (S,) bias."""
    B, P, S = x.shape
    F = P * S

    # positions[p, :] = p * W[:, 0] + b, computed once in the wrapper (f32).
    # (f32 patch-index ramp is exact up to 2^24 patches -- far beyond realistic P.)
    w_row = w.reshape(1, S).astype(jnp.float32)
    b_row = b.reshape(1, S).astype(jnp.float32)
    pos = (jnp.arange(P, dtype=jnp.float32)[:, None] * w_row + b_row).reshape(1, F)

    x2 = x.reshape(B, F)  # lane-dense layout: last dim = P*S lanes

    # Row tiling: whole tensor in one block if small, else multiple-of-8 row
    # blocks of ~_TARGET_BLOCK_BYTES each.
    itemsize = jnp.dtype(x.dtype).itemsize
    bytes_per_row = F * itemsize
    if B * bytes_per_row <= _TARGET_BLOCK_BYTES:
        rows_per_block = B            # equals full array dim -> satisfies tiling rule
    else:
        rows_per_block = (_TARGET_BLOCK_BYTES // bytes_per_row) // 8 * 8
        rows_per_block = max(8, min(rows_per_block, (B // 8) * 8 if B >= 8 else B))
    grid = (pl.cdiv(B, rows_per_block),)

    out = pl.pallas_call(
        _add_pos_kernel,
        out_shape=jax.ShapeDtypeStruct((B, F), x.dtype),
        grid_spec=pltpu.PrefetchScalarGridSpec(
            num_scalar_prefetch=0,
            grid=grid,
            in_specs=[
                pl.BlockSpec((rows_per_block, F), lambda i: (i, 0)),
                pl.BlockSpec((1, F), lambda i: (0, 0)),   # constant block -> DMA'd once
            ],
            out_specs=pl.BlockSpec((rows_per_block, F), lambda i: (i, 0)),
        ),
        compiler_params=pltpu.CompilerParams(
            dimension_semantics=("parallel",) if grid[0] > 1 else ("arbitrary",)),
        input_output_aliases={0: 0},   # add-into-place: reuse x's buffer for the output
    )(x2, pos)
    return out.reshape(B, P, S)


def _reference(x, w, b):
    """Pure-JAX reference mirroring the PyTorch forward."""
    P = x.shape[1]
    pos_idx = jnp.arange(P, dtype=jnp.float32)[:, None]       # (P, 1)
    positions = pos_idx @ w.T + b                              # (P, S)
    return x + positions[None, :, :]


if __name__ == "__main__":
    # Module hyper-parameters (small, consistent with the forward pass):
    num_image_patches = 4          # -> P = num_image_patches**2 = 16 patches
    patch_size = 8
    num_channels = 2               # -> S = patch_size**2 * num_channels = 128
    P = num_image_patches ** 2
    S = patch_size ** 2 * num_channels
    B = 2

    key = jax.random.PRNGKey(0)
    kx, kw, kb = jax.random.split(key, 3)

    x = jax.random.normal(kx, (B, P, S), dtype=jnp.float32)
    # PyTorch nn.Linear(1, S) parameter shapes: weight (S, 1), bias (S,).
    w = jax.random.normal(kw, (S, 1), dtype=jnp.float32) * 0.5
    b = jax.random.normal(kb, (S,), dtype=jnp.float32) * 0.5

    # Compute the reference before the kernel (the kernel aliases its input
    # internally; the caller's buffers are never mutated, this is just tidy).
    ref = _reference(x, w, b)

    out = image_positional_encoding(x, w, b)
    out = jax.block_until_ready(out)

    assert out.shape == (B, P, S)
    assert jnp.allclose(out, ref, atol=1e-5, rtol=1e-5), "mismatch vs reference"

    print("KERNEL_OK")
</pallas_src>

<mosaic_0001>
module attributes {stable_mosaic.version = 11 : i64} {
  func.func @_add_pos_kernel(%arg0: i32, %arg1: memref<2x2048xf32, #tpu.memory_space<vmem>>, %arg2: memref<1x2048xf32, #tpu.memory_space<vmem>>, %arg3: memref<2x2048xf32, #tpu.memory_space<vmem>>) attributes {dimension_semantics = [#tpu.dimension_semantics<arbitrary>], iteration_bounds = array<i64: 1>, scalar_prefetch = 0 : i64, scratch_operands = 0 : i64, tpu.core_type = #tpu.core_type<tc>, window_params = [{transform_indices = @transform_0, window_bounds = array<i64: 2, 2048>}, {pipeline_mode = #tpu.pipeline_mode<synchronous>, transform_indices = @transform_1, window_bounds = array<i64: 1, 2048>}, {transform_indices = @transform_2, window_bounds = array<i64: 2, 2048>}]} {
    %c0 = arith.constant 0 : index
    %c0_0 = arith.constant 0 : index
    %0 = vector.load %arg1[%c0, %c0_0] : memref<2x2048xf32, #tpu.memory_space<vmem>>, vector<2x2048xf32>
    %c0_1 = arith.constant 0 : index
    %c0_2 = arith.constant 0 : index
    %1 = vector.load %arg2[%c0_1, %c0_2] : memref<1x2048xf32, #tpu.memory_space<vmem>>, vector<1x2048xf32>
    %2 = vector.broadcast %1 : vector<1x2048xf32> to vector<2x2048xf32>
    %3 = arith.addf %0, %2 : vector<2x2048xf32>
    %c0_3 = arith.constant 0 : index
    %c0_4 = arith.constant 0 : index
    %4 = vector.load %arg3[%c0_3, %c0_4] : memref<2x2048xf32, #tpu.memory_space<vmem>>, vector<2x2048xf32>
    tpu.vector_store %arg3[%c0_3, %c0_4], %3 {strides = array<i32>} : memref<2x2048xf32, #tpu.memory_space<vmem>>, vector<2x2048xf32>,
    return
  }
  func.func @transform_0(%arg0: i32) -> (i32, i32) {
    %c0_i32 = arith.constant 0 : i32
    %c0_i32_0 = arith.constant 0 : i32
    return %arg0, %c0_i32 : i32, i32
  }
  func.func @transform_1(%arg0: i32) -> (i32, i32) {
    %c0_i32 = arith.constant 0 : i32
    %c0_i32_0 = arith.constant 0 : i32
    %c0_i32_1 = arith.constant 0 : i32
    return %c0_i32, %c0_i32_0 : i32, i32
  }
  func.func @transform_2(%arg0: i32) -> (i32, i32) {
    %c0_i32 = arith.constant 0 : i32
    %c0_i32_0 = arith.constant 0 : i32
    return %arg0, %c0_i32 : i32, i32
  }
}

</mosaic_0001>

<bundles_post_ra>
// kernel: image_positional_encoding.1
= control target key start
LH: loop header
LB: loop body
LE: loop exit
PB: predicated region body
PF: predicated region fallthrough
CT: control target
= control target key end

     0   :  { %vm47_vm0 = vcmask 1041408   ;;  %vm49_vm1 = vcmask 1045508   ;;  %vm51_vm2 = vcmask 1043456   ;;  %s135_s1 = inlined_call_operand.vmem [shape: f32[1,2048], index: 1, kind: input, shape index: {}]   ;;  %s136_s0 = inlined_call_operand.vmem [shape: f32[2,2048], index: 0, kind: input, shape index: {}, may-alias: {0,2}]   ;;  %s137_s2 = inlined_call_operand.vmem [shape: f32[2,2048], index: 2, kind: output, shape index: {}, may-alias: {0,2}]  }
   0x1   :  { %v15_v0 = vld [vmem:[%s135_s1] sm:$0xff]  ;;  %v16_v5 = vld [vmem:[%s135_s1 + $0x8] sm:$0xff]  ;;  %v13_v33 = vld [vmem:[%s136_s0 + $0x10] sm:$0xff] }
   0x2   :  { %v19_v1 = vperm.slane %v15_v0, 0  ;;  %v20_v2 = vperm.slane %v15_v0, 1  ;;  %v21_v3 = vperm.slane %v15_v0, 2  ;;  %v22_v4 = vperm.slane %v15_v0, 3  ;;  %v11_v14 = vld [vmem:[%s136_s0] sm:$0xff]  ;;  %v12_v21 = vld [vmem:[%s136_s0 + $0x8] sm:$0xff] }
   0x3   :  { %v23_v6 = vperm.slane %v15_v0, 4  ;;  %v24_v7 = vperm.slane %v15_v0, 5  ;;  %v25_v8 = vperm.slane %v15_v0, 6  ;;  %v26_v9 = vperm.slane %v15_v0, 7 }
   0x4   :  { %v35_v10 = vrot.slane %v20_v2, 6  ;;  %v36_v11 = vrot.slane %v21_v3, 4  ;;  %v37_v12 = vrot.slane %v22_v4, 2  ;;  %v27_v13 = vperm.slane %v16_v5, 0 }
   0x5   :  { %v38_v15 = vrot.slane %v24_v7, 6  ;;  %v39_v16 = vrot.slane %v25_v8, 4  ;;  %v40_v17 = vrot.slane %v26_v9, 2  ;;  %v28_v18 = vperm.slane %v16_v5, 1 }
   0x6   :  { %v48_v19 = vsel %vm47_vm0, %v19_v1, %v35_v10  ;;  %v50_v20 = vsel %vm49_vm1, %v36_v11, %v37_v12  ;;  %v29_v22 = vperm.slane %v16_v5, 2  ;;  %v30_v23 = vperm.slane %v16_v5, 3 }
   0x7   :  { %v52_v24 = vsel %vm51_vm2, %v48_v19, %v50_v20  ;;  %v53_v25 = vsel %vm47_vm0, %v23_v6, %v38_v15  ;;  %v54_v26 = vsel %vm49_vm1, %v39_v16, %v40_v17  ;;  %v41_v27 = vrot.slane %v28_v18, 6 }
   0x8   :  { %v66_v28 = vadd.f32 %v52_v24, %v11_v14  ;;  %v55_v29 = vsel %vm51_vm2, %v53_v25, %v54_v26  ;;  %v42_v30 = vrot.slane %v29_v22, 4  ;;  %v43_v31 = vrot.slane %v30_v23, 2 }
   0x9   :  { %v67_v32 = vadd.f32 %v55_v29, %v12_v21  ;;  %v56_v34 = vsel %vm47_vm0, %v27_v13, %v41_v27  ;;  %v31_v35 = vperm.slane %v16_v5, 4  ;;  %v32_v36 = vperm.slane %v16_v5, 5 }
   0xa   :  { %70 = vst [vmem:[%s137_s2] sm:$0xff] %v66_v28  ;;  %v57_v37 = vsel %vm49_vm1, %v42_v30, %v43_v31  ;;  %v33_v38 = vperm.slane %v16_v5, 6  ;;  %v34_v39 = vperm.slane %v16_v5, 7 }
   0xb   :  { %71 = vst [vmem:[%s137_s2 + $0x8] sm:$0xff] %v67_v32  ;;  %v58_v40 = vsel %vm51_vm2, %v56_v34, %v57_v37  ;;  %v44_v41 = vrot.slane %v32_v36, 6 }
   0xc   :  { %v68_v42 = vadd.f32 %v58_v40, %v13_v33  ;;  %v45_v43 = vrot.slane %v33_v38, 4  ;;  %v46_v44 = vrot.slane %v34_v39, 2 }
   0xd   :  { %v59_v46 = vsel %vm47_vm0, %v31_v35, %v44_v41 }
   0xe   :  { %v60_v47 = vsel %vm49_vm1, %v45_v43, %v46_v44 }
   0xf   :  { %v61_v48 = vsel %vm51_vm2, %v59_v46, %v60_v47 }
  0x12   :  { %v14_v45 = vld [vmem:[%s136_s0 + $0x18] sm:$0xff] }
  0x13   :  { %72 = vst [vmem:[%s137_s2 + $0x10] sm:$0xff] %v68_v42  ;;  %v69_v49 = vadd.f32 %v61_v48, %v14_v45 }
  0x15   :  { %73 = vst [vmem:[%s137_s2 + $0x18] sm:$0xff] %v69_v49 }

</bundles_post_ra>
